<compile_context>
chip_gen: v7x
topology: tpu7x:2x2x1
jax: 0.10.0
libtpu: 0.0.40
codegen_flags: <defaults>
</compile_context>

<pallas_src>
import functools

import jax
import jax.numpy as jnp
from jax import lax
from jax.experimental import pallas as pl
from jax.experimental.pallas import tpu as pltpu

HID_PAD = 128          # hidden dim padded to a full 128-lane vreg width
NUM_LAYERS = 3


def _round_up(x, m):
    return ((x + m - 1) // m) * m


# ---------------------------------------------------------------------------
# Fused Pallas kernel
# ---------------------------------------------------------------------------

def fused_gcn_kernel(a_ref, z0_ref, w_ref, b_ref, p_ref,
                     wf1_ref, bf1_ref, wf2_ref, bf2_ref,
                     o_ref,
                     z_ref, h_ref, acc_ref, pool_ref):
    """Grid = (layer, row_tile, col_tile); col_tile is the A-reduction axis.

    Per layer l:
      Z      = H_{l-1} @ W_l            (layer prologue; layer 0 uses precomputed X@W1)
      M[r]   = sum_c A[r, c] @ Z[c] + b_l   (tiled aggregation, f32 accumulator)
      H_l[r] = relu(M[r] / max(||M[r]||_2, 1e-12))
    On the final layer the epilogue also accumulates pool += P[:, r] @ H_L[r]; the
    very last grid step runs relu(fc1) -> fc2 -> log_softmax and writes the output.
    """
    l, r, c = pl.program_id(0), pl.program_id(1), pl.program_id(2)
    L, R, C = pl.num_programs(0), pl.num_programs(1), pl.num_programs(2)
    tm = acc_ref.shape[0]
    tk = a_ref.shape[1]

    # ---- layer prologue: feature transform for the whole (VMEM-resident) H ----
    @pl.when((r == 0) & (c == 0))
    def _layer_start():
        @pl.when(l == 0)
        def _():
            pool_ref[...] = jnp.zeros_like(pool_ref)
            z_ref[...] = z0_ref[...]                      # X @ W1, precomputed in XLA
        @pl.when(l > 0)
        def _():
            # bf16 x bf16 -> f32 accumulate on the MXU, store as bf16 operand for A@Z
            z_ref[...] = jnp.dot(h_ref[...].astype(z_ref.dtype), w_ref[...],
                                 preferred_element_type=jnp.float32
                                 ).astype(z_ref.dtype)

    # ---- tiled aggregation: acc += A[r, c] @ Z[c]   (bf16 x bf16 -> f32) ----
    @pl.when(c == 0)
    def _zero_acc():
        acc_ref[...] = jnp.zeros_like(acc_ref)

    zc = z_ref[pl.ds(pl.multiple_of(c * tk, tk), tk), :]
    acc_ref[...] += jnp.dot(a_ref[...], zc, preferred_element_type=jnp.float32)

    # ---- row-tile epilogue: bias, l2-normalize rows (rsqrt), relu, write H ----
    @pl.when(c == C - 1)
    def _row_done():
        m = acc_ref[...] + b_ref[...]
        ss = jnp.sum(m * m, axis=1, keepdims=True)
        inv = lax.rsqrt(jnp.maximum(ss, 1e-24))           # == 1 / max(||row||_2, 1e-12)
        h_new = jnp.maximum(m * inv, 0.0)
        h_ref[pl.ds(pl.multiple_of(r * tm, tm), tm), :] = h_new

        @pl.when(l == L - 1)
        def _pool():   # global_add_pool, accumulated tile by tile (f32 for accuracy)
            pool_ref[...] += jnp.dot(p_ref[...], h_new,
                                     preferred_element_type=jnp.float32)

        @pl.when((l == L - 1) & (r == R - 1))
        def _head():   # relu(fc1) -> fc2 -> log_softmax, once, at the last grid step
            g = pool_ref[...]
            hh = jnp.maximum(
                jnp.dot(g, wf1_ref[...], preferred_element_type=jnp.float32)
                + bf1_ref[...], 0.0)
            zz = (jnp.dot(hh, wf2_ref[...], preferred_element_type=jnp.float32)
                  + bf2_ref[...])
            zz = zz - jnp.max(zz, axis=-1, keepdims=True)
            o_ref[...] = zz - jnp.log(jnp.sum(jnp.exp(zz), axis=-1, keepdims=True))


# ---------------------------------------------------------------------------
# Wrapper
# ---------------------------------------------------------------------------

@functools.partial(jax.jit, static_argnames=("tile_n",))
def gcn_forward(params, x, a_hat, pool, *, tile_n=128):
    n = x.shape[0]
    g = pool.shape[0]
    hid = params["w_conv2"].shape[0]
    nc = params["w_fc2"].shape[1]
    assert tile_n % 128 == 0 and hid <= HID_PAD

    n_pad = _round_up(n, tile_n)
    g_pad = _round_up(g, 8)
    f32, bf16 = jnp.float32, jnp.bfloat16

    # conv1 feature transform (K = num_features = 3) stays out of the MXU kernel.
    z0 = jnp.dot(x.astype(f32), params["w_conv1"].astype(f32))
    z0 = jnp.zeros((n_pad, HID_PAD), bf16).at[:n, :hid].set(z0.astype(bf16))

    a_p = jnp.zeros((n_pad, n_pad), bf16).at[:n, :n].set(a_hat.astype(bf16))
    p_p = jnp.zeros((g_pad, n_pad), f32).at[:g, :n].set(pool.astype(f32))

    # Stacked layer weights (slot 0 is a never-used dummy; layer 0 uses z0) + biases.
    # Weights streamed as bf16 (MXU operand); biases stay f32.
    w_stack = jnp.zeros((NUM_LAYERS, HID_PAD, HID_PAD), bf16)
    w_stack = w_stack.at[1, :hid, :hid].set(params["w_conv2"].astype(bf16))
    w_stack = w_stack.at[2, :hid, :hid].set(params["w_conv3"].astype(bf16))
    b_stack = jnp.zeros((NUM_LAYERS, 1, HID_PAD), f32)
    b_stack = b_stack.at[0, 0, :hid].set(params["b_conv1"].astype(f32))
    b_stack = b_stack.at[1, 0, :hid].set(params["b_conv2"].astype(f32))
    b_stack = b_stack.at[2, 0, :hid].set(params["b_conv3"].astype(f32))

    wf1 = jnp.zeros((HID_PAD, HID_PAD), f32).at[:hid, :hid].set(params["w_fc1"].astype(f32))
    bf1 = jnp.zeros((1, HID_PAD), f32).at[0, :hid].set(params["b_fc1"].astype(f32))
    wf2 = jnp.zeros((HID_PAD, nc), f32).at[:hid, :].set(params["w_fc2"].astype(f32))
    bf2 = params["b_fc2"].astype(f32).reshape(1, nc)

    r_tiles = n_pad // tile_n
    grid = (NUM_LAYERS, r_tiles, r_tiles)

    out = pl.pallas_call(
        fused_gcn_kernel,
        out_shape=jax.ShapeDtypeStruct((g_pad, nc), f32),
        grid=grid,
        in_specs=[
            pl.BlockSpec((tile_n, tile_n), lambda l, r, c: (r, c)),            # A_hat tile
            pl.BlockSpec((n_pad, HID_PAD), lambda l, r, c: (0, 0)),            # X @ W1
            pl.BlockSpec((None, HID_PAD, HID_PAD), lambda l, r, c: (l, 0, 0)),  # W_l (bf16)
            pl.BlockSpec((None, 1, HID_PAD), lambda l, r, c: (l, 0, 0)),        # b_l
            pl.BlockSpec((g_pad, tile_n), lambda l, r, c: (0, r)),             # P col tile
            pl.BlockSpec((HID_PAD, HID_PAD), lambda l, r, c: (0, 0)),          # fc1 W
            pl.BlockSpec((1, HID_PAD), lambda l, r, c: (0, 0)),                # fc1 b
            pl.BlockSpec((HID_PAD, nc), lambda l, r, c: (0, 0)),               # fc2 W
            pl.BlockSpec((1, nc), lambda l, r, c: (0, 0)),                     # fc2 b
        ],
        out_specs=pl.BlockSpec((g_pad, nc), lambda l, r, c: (0, 0)),
        scratch_shapes=[
            pltpu.VMEM((n_pad, HID_PAD), bf16),     # Z = H @ W_l (bf16 MXU operand)
            pltpu.VMEM((n_pad, HID_PAD), f32),      # H  (resident activations)
            pltpu.VMEM((tile_n, HID_PAD), f32),     # per-row-tile f32 accumulator
            pltpu.VMEM((g_pad, HID_PAD), f32),      # pooled-sum accumulator
        ],
        compiler_params=pltpu.CompilerParams(
            # Layer l+1 reads every row of the VMEM-resident H written by layer l,
            # so no axis can be megacore-parallel in the fused design.
            dimension_semantics=("arbitrary", "arbitrary", "arbitrary")),
    )(a_p, z0, w_stack, b_stack, p_p, wf1, bf1, wf2, bf2)

    return out[:g]


# ---------------------------------------------------------------------------
# Graph glue (plain JAX): normalized adjacency + pooling matrix
# ---------------------------------------------------------------------------

def build_normalized_adjacency(edge_index, edge_weight, num_nodes):
    """Dense GCN-normalized adjacency matching PyG GCNConv (add_self_loops=True)."""
    src, dst = edge_index[0], edge_index[1]
    if edge_weight is None:
        edge_weight = jnp.ones(src.shape[0], dtype=jnp.float32)
    a = jnp.zeros((num_nodes, num_nodes), dtype=jnp.float32)
    a = a.at[dst, src].add(edge_weight)            # row = target, col = source
    a = a + jnp.eye(num_nodes, dtype=jnp.float32)  # self loops (weight 1)
    deg = jnp.sum(a, axis=1)
    d_inv_sqrt = jnp.where(deg > 0, 1.0 / jnp.sqrt(deg), 0.0)
    return d_inv_sqrt[:, None] * a * d_inv_sqrt[None, :]


def build_pool_matrix(batch, num_graphs):
    """P[g, n] = 1 if node n belongs to graph g (global_add_pool)."""
    return (batch[None, :] == jnp.arange(num_graphs)[:, None]).astype(jnp.float32)


def gcn_reference(params, x, a_hat, pool):
    """Pure-JAX f32 reference of the module's forward (for validation)."""
    def layer(h_in, w, b):
        m = a_hat @ (h_in @ w) + b
        nrm = jnp.sqrt(jnp.sum(m * m, axis=1, keepdims=True))
        return jnp.maximum(m / jnp.maximum(nrm, 1e-12), 0.0)
    h = layer(x, params["w_conv1"], params["b_conv1"])
    h = layer(h, params["w_conv2"], params["b_conv2"])
    h = layer(h, params["w_conv3"], params["b_conv3"])
    g = pool @ h
    hh = jnp.maximum(g @ params["w_fc1"] + params["b_fc1"], 0.0)
    z = hh @ params["w_fc2"] + params["b_fc2"]
    return jax.nn.log_softmax(z, axis=-1)


# ---------------------------------------------------------------------------
# Main
# ---------------------------------------------------------------------------

if __name__ == "__main__":
    key = jax.random.PRNGKey(0)

    num_features = 3
    num_hidden = 32
    num_classes = 2
    nodes_per_graph = 8
    num_graphs = 2
    n = nodes_per_graph * num_graphs  # 16 nodes total

    keys = jax.random.split(key, 12)
    scale = 0.1
    params = {
        "w_conv1": scale * jax.random.normal(keys[0], (num_features, num_hidden), jnp.float32),
        "b_conv1": scale * jax.random.normal(keys[1], (num_hidden,), jnp.float32),
        "w_conv2": scale * jax.random.normal(keys[2], (num_hidden, num_hidden), jnp.float32),
        "b_conv2": scale * jax.random.normal(keys[3], (num_hidden,), jnp.float32),
        "w_conv3": scale * jax.random.normal(keys[4], (num_hidden, num_hidden), jnp.float32),
        "b_conv3": scale * jax.random.normal(keys[5], (num_hidden,), jnp.float32),
        "w_fc1": scale * jax.random.normal(keys[6], (num_hidden, num_hidden), jnp.float32),
        "b_fc1": scale * jax.random.normal(keys[7], (num_hidden,), jnp.float32),
        "w_fc2": scale * jax.random.normal(keys[8], (num_hidden, num_classes), jnp.float32),
        "b_fc2": scale * jax.random.normal(keys[9], (num_classes,), jnp.float32),
    }

    x = jax.random.normal(keys[10], (n, num_features), jnp.float32)

    # Edges: a bidirectional ring inside each graph
    src_list, dst_list = [], []
    for gi in range(num_graphs):
        base = gi * nodes_per_graph
        for i in range(nodes_per_graph):
            a_node = base + i
            b_node = base + (i + 1) % nodes_per_graph
            src_list += [a_node, b_node]
            dst_list += [b_node, a_node]
    edge_index = jnp.array([src_list, dst_list], dtype=jnp.int32)
    edge_weights = 0.5 + jax.random.uniform(keys[11], (edge_index.shape[1],), jnp.float32)

    batch = jnp.repeat(jnp.arange(num_graphs, dtype=jnp.int32), nodes_per_graph)

    a_hat = build_normalized_adjacency(edge_index, edge_weights, n)
    pool = build_pool_matrix(batch, num_graphs)

    out = gcn_forward(params, x, a_hat, pool)
    out = jax.block_until_ready(out)

    assert out.shape == (num_graphs, num_classes)
    assert bool(jnp.all(jnp.isfinite(out)))
    # log_softmax rows exp-sum to ~1
    assert bool(jnp.allclose(jnp.sum(jnp.exp(out), axis=-1), 1.0, atol=1e-5))
    # Matches the f32 reference (loose tolerance: A_hat / X@W1 / W_l streamed as bf16)
    ref = gcn_reference(params, x, a_hat, pool)
    assert bool(jnp.allclose(out, ref, atol=5e-2, rtol=5e-2))

    # TODO(synk): backward hook (final_conv_grads) is gradient-capture only; not a
    # forward-pass op, so it is not implemented in the Pallas kernel.
    print("KERNEL_OK")
</pallas_src>

<mosaic_0001>
module attributes {stable_mosaic.version = 11 : i64} {
  func.func @fused_gcn_kernel(%arg0: i32, %arg1: i32, %arg2: i32, %arg3: memref<128x128xbf16, #tpu.memory_space<vmem>>, %arg4: memref<128x128xbf16, #tpu.memory_space<vmem>>, %arg5: memref<1x128x128xbf16, #tpu.memory_space<vmem>>, %arg6: memref<1x1x128xf32, #tpu.memory_space<vmem>>, %arg7: memref<8x128xf32, #tpu.memory_space<vmem>>, %arg8: memref<128x128xf32, #tpu.memory_space<vmem>>, %arg9: memref<1x128xf32, #tpu.memory_space<vmem>>, %arg10: memref<128x2xf32, #tpu.memory_space<vmem>>, %arg11: memref<1x2xf32, #tpu.memory_space<vmem>>, %arg12: memref<8x2xf32, #tpu.memory_space<vmem>>, %arg13: memref<128x128xbf16, #tpu.memory_space<vmem>>, %arg14: memref<128x128xf32, #tpu.memory_space<vmem>>, %arg15: memref<128x128xf32, #tpu.memory_space<vmem>>, %arg16: memref<8x128xf32, #tpu.memory_space<vmem>>) attributes {dimension_semantics = [#tpu.dimension_semantics<arbitrary>, #tpu.dimension_semantics<arbitrary>, #tpu.dimension_semantics<arbitrary>], iteration_bounds = array<i64: 3, 1, 1>, scalar_prefetch = 0 : i64, scratch_operands = 4 : i64, tpu.core_type = #tpu.core_type<tc>, window_params = [{transform_indices = @transform_0, window_bounds = array<i64: 128, 128>}, {pipeline_mode = #tpu.pipeline_mode<synchronous>, transform_indices = @transform_1, window_bounds = array<i64: 128, 128>}, {transform_indices = @transform_2, window_bounds = array<i64: 1, 128, 128>}, {transform_indices = @transform_3, window_bounds = array<i64: 1, 1, 128>}, {transform_indices = @transform_4, window_bounds = array<i64: 8, 128>}, {pipeline_mode = #tpu.pipeline_mode<synchronous>, transform_indices = @transform_5, window_bounds = array<i64: 128, 128>}, {pipeline_mode = #tpu.pipeline_mode<synchronous>, transform_indices = @transform_6, window_bounds = array<i64: 1, 128>}, {pipeline_mode = #tpu.pipeline_mode<synchronous>, transform_indices = @transform_7, window_bounds = array<i64: 128, 2>}, {pipeline_mode = #tpu.pipeline_mode<synchronous>, transform_indices = @transform_8, window_bounds = array<i64: 1, 2>}, {pipeline_mode = #tpu.pipeline_mode<synchronous>, transform_indices = @transform_9, window_bounds = array<i64: 8, 2>}]} {
    %c0_i32 = arith.constant 0 : i32
    %0 = arith.cmpi eq, %arg1, %c0_i32 : i32
    %c0_i32_0 = arith.constant 0 : i32
    %1 = arith.cmpi eq, %arg2, %c0_i32_0 : i32
    %2 = arith.andi %0, %1 : i1
    %3 = arith.extui %2 : i1 to i32
    %c0_i32_1 = arith.constant 0 : i32
    %4 = arith.cmpi ne, %3, %c0_i32_1 : i32
    scf.if %4 {
      %c0_i32_12 = arith.constant 0 : i32
      %20 = arith.cmpi eq, %arg0, %c0_i32_12 : i32
      %21 = arith.extui %20 : i1 to i32
      %c0_i32_13 = arith.constant 0 : i32
      %22 = arith.cmpi ne, %21, %c0_i32_13 : i32
      scf.if %22 {
        %cst_16 = arith.constant 0.000000e+00 : f32
        %26 = vector.broadcast %cst_16 : f32 to vector<8x128xf32>
        %c0_17 = arith.constant 0 : index
        %c0_18 = arith.constant 0 : index
        %27 = vector.load %arg16[%c0_17, %c0_18] : memref<8x128xf32, #tpu.memory_space<vmem>>, vector<8x128xf32>
        tpu.vector_store %arg16[%c0_17, %c0_18], %26 {strides = array<i32>} : memref<8x128xf32, #tpu.memory_space<vmem>>, vector<8x128xf32>,
        %c0_19 = arith.constant 0 : index
        %c0_20 = arith.constant 0 : index
        %28 = vector.load %arg4[%c0_19, %c0_20] : memref<128x128xbf16, #tpu.memory_space<vmem>>, vector<128x128xbf16>
        %c0_21 = arith.constant 0 : index
        %c0_22 = arith.constant 0 : index
        %29 = vector.load %arg13[%c0_21, %c0_22] : memref<128x128xbf16, #tpu.memory_space<vmem>>, vector<128x128xbf16>
        tpu.vector_store %arg13[%c0_21, %c0_22], %28 {strides = array<i32>} : memref<128x128xbf16, #tpu.memory_space<vmem>>, vector<128x128xbf16>,
      } else {
      }
      %c0_i32_14 = arith.constant 0 : i32
      %23 = arith.cmpi sgt, %arg0, %c0_i32_14 : i32
      %24 = arith.extui %23 : i1 to i32
      %c0_i32_15 = arith.constant 0 : i32
      %25 = arith.cmpi ne, %24, %c0_i32_15 : i32
      scf.if %25 {
        %c0_16 = arith.constant 0 : index
        %c0_17 = arith.constant 0 : index
        %26 = vector.load %arg14[%c0_16, %c0_17] : memref<128x128xf32, #tpu.memory_space<vmem>>, vector<128x128xf32>
        %27 = arith.truncf %26 : vector<128x128xf32> to vector<128x128xbf16>
        %c0_18 = arith.constant 0 : index
        %c0_19 = arith.constant 0 : index
        %c0_20 = arith.constant 0 : index
        %28 = vector.load %arg5[%c0_18, %c0_19, %c0_20] : memref<1x128x128xbf16, #tpu.memory_space<vmem>>, vector<1x128x128xbf16>
        %29 = vector.shape_cast %28 : vector<1x128x128xbf16> to vector<128x128xbf16>
        %cst_21 = arith.constant dense<0.000000e+00> : vector<128x128xf32>
        %30 = tpu.matmul %27, %29, %cst_21 {dimension_numbers = #tpu.dot_dimension_numbers<[1], [0], [0], [1], [0, 0, 1, 1], [], []>} : vector<128x128xbf16>, vector<128x128xbf16>, vector<128x128xf32> -> vector<128x128xf32>
        %31 = arith.truncf %30 : vector<128x128xf32> to vector<128x128xbf16>
        %c0_22 = arith.constant 0 : index
        %c0_23 = arith.constant 0 : index
        %32 = vector.load %arg13[%c0_22, %c0_23] : memref<128x128xbf16, #tpu.memory_space<vmem>>, vector<128x128xbf16>
        tpu.vector_store %arg13[%c0_22, %c0_23], %31 {strides = array<i32>} : memref<128x128xbf16, #tpu.memory_space<vmem>>, vector<128x128xbf16>,
      } else {
      }
    } else {
    }
    %c0_i32_2 = arith.constant 0 : i32
    %5 = arith.cmpi eq, %arg2, %c0_i32_2 : i32
    %6 = arith.extui %5 : i1 to i32
    %c0_i32_3 = arith.constant 0 : i32
    %7 = arith.cmpi ne, %6, %c0_i32_3 : i32
    scf.if %7 {
      %cst_12 = arith.constant 0.000000e+00 : f32
      %20 = vector.broadcast %cst_12 : f32 to vector<128x128xf32>
      %c0_13 = arith.constant 0 : index
      %c0_14 = arith.constant 0 : index
      %21 = vector.load %arg15[%c0_13, %c0_14] : memref<128x128xf32, #tpu.memory_space<vmem>>, vector<128x128xf32>
      tpu.vector_store %arg15[%c0_13, %c0_14], %20 {strides = array<i32>} : memref<128x128xf32, #tpu.memory_space<vmem>>, vector<128x128xf32>,
    } else {
    }
    %c128_i32 = arith.constant 128 : i32
    %8 = arith.muli %arg2, %c128_i32 : i32
    %9 = tpu.assume_multiple %8, 128 : i32
    %10 = arith.index_cast %9 : i32 to index
    %c0 = arith.constant 0 : index
    %11 = vector.load %arg13[%10, %c0] : memref<128x128xbf16, #tpu.memory_space<vmem>>, vector<128x128xbf16>
    %c0_4 = arith.constant 0 : index
    %c0_5 = arith.constant 0 : index
    %12 = vector.load %arg15[%c0_4, %c0_5] : memref<128x128xf32, #tpu.memory_space<vmem>>, vector<128x128xf32>
    %c0_6 = arith.constant 0 : index
    %c0_7 = arith.constant 0 : index
    %13 = vector.load %arg3[%c0_6, %c0_7] : memref<128x128xbf16, #tpu.memory_space<vmem>>, vector<128x128xbf16>
    %cst = arith.constant dense<0.000000e+00> : vector<128x128xf32>
    %14 = tpu.matmul %13, %11, %cst {dimension_numbers = #tpu.dot_dimension_numbers<[1], [0], [0], [1], [0, 0, 1, 1], [], []>} : vector<128x128xbf16>, vector<128x128xbf16>, vector<128x128xf32> -> vector<128x128xf32>
    %15 = arith.addf %12, %14 : vector<128x128xf32>
    %c0_8 = arith.constant 0 : index
    %c0_9 = arith.constant 0 : index
    %16 = vector.load %arg15[%c0_8, %c0_9] : memref<128x128xf32, #tpu.memory_space<vmem>>, vector<128x128xf32>
    tpu.vector_store %arg15[%c0_8, %c0_9], %15 {strides = array<i32>} : memref<128x128xf32, #tpu.memory_space<vmem>>, vector<128x128xf32>,
    %c0_i32_10 = arith.constant 0 : i32
    %17 = arith.cmpi eq, %arg2, %c0_i32_10 : i32
    %18 = arith.extui %17 : i1 to i32
    %c0_i32_11 = arith.constant 0 : i32
    %19 = arith.cmpi ne, %18, %c0_i32_11 : i32
    scf.if %19 {
      %c0_12 = arith.constant 0 : index
      %c0_13 = arith.constant 0 : index
      %20 = vector.load %arg15[%c0_12, %c0_13] : memref<128x128xf32, #tpu.memory_space<vmem>>, vector<128x128xf32>
      %c0_14 = arith.constant 0 : index
      %c0_15 = arith.constant 0 : index
      %c0_16 = arith.constant 0 : index
      %21 = vector.load %arg6[%c0_14, %c0_15, %c0_16] : memref<1x1x128xf32, #tpu.memory_space<vmem>>, vector<1x1x128xf32>
      %22 = vector.shape_cast %21 : vector<1x1x128xf32> to vector<1x128xf32>
      %23 = vector.broadcast %22 : vector<1x128xf32> to vector<128x128xf32>
      %24 = arith.addf %20, %23 : vector<128x128xf32>
      %25 = arith.mulf %24, %24 : vector<128x128xf32>
      %cst_17 = arith.constant dense<0.000000e+00> : vector<128xf32>
      %26 = vector.multi_reduction <add>, %25, %cst_17 [1] : vector<128x128xf32> to vector<128xf32>
      %27 = vector.shape_cast %26 : vector<128xf32> to vector<128x1xf32>
      %cst_18 = arith.constant 1.000000e-24 : f32
      %28 = vector.broadcast %cst_18 : f32 to vector<128x1xf32>
      %29 = arith.maximumf %27, %28 : vector<128x1xf32>
      %30 = math.rsqrt %29 : vector<128x1xf32>
      %31 = vector.broadcast %30 : vector<128x1xf32> to vector<128x128xf32>
      %32 = arith.mulf %24, %31 : vector<128x128xf32>
      %cst_19 = arith.constant 0.000000e+00 : f32
      %33 = vector.broadcast %cst_19 : f32 to vector<128x128xf32>
      %34 = arith.maximumf %32, %33 : vector<128x128xf32>
      %c128_i32_20 = arith.constant 128 : i32
      %35 = arith.muli %arg1, %c128_i32_20 : i32
      %36 = tpu.assume_multiple %35, 128 : i32
      %37 = arith.index_cast %36 : i32 to index
      %c0_21 = arith.constant 0 : index
      %38 = vector.load %arg14[%37, %c0_21] : memref<128x128xf32, #tpu.memory_space<vmem>>, vector<128x128xf32>
      tpu.vector_store %arg14[%37, %c0_21], %34 {strides = array<i32>} : memref<128x128xf32, #tpu.memory_space<vmem>>, vector<128x128xf32>,
      %c2_i32 = arith.constant 2 : i32
      %39 = arith.cmpi eq, %arg0, %c2_i32 : i32
      %40 = arith.extui %39 : i1 to i32
      %c0_i32_22 = arith.constant 0 : i32
      %41 = arith.cmpi ne, %40, %c0_i32_22 : i32
      scf.if %41 {
        %c0_26 = arith.constant 0 : index
        %c0_27 = arith.constant 0 : index
        %47 = vector.load %arg16[%c0_26, %c0_27] : memref<8x128xf32, #tpu.memory_space<vmem>>, vector<8x128xf32>
        %c0_28 = arith.constant 0 : index
        %c0_29 = arith.constant 0 : index
        %48 = vector.load %arg7[%c0_28, %c0_29] : memref<8x128xf32, #tpu.memory_space<vmem>>, vector<8x128xf32>
        %cst_30 = arith.constant dense<0.000000e+00> : vector<8x128xf32>
        %49 = tpu.matmul %48, %34, %cst_30 {dimension_numbers = #tpu.dot_dimension_numbers<[1], [0], [0], [1], [0, 0, 1, 1], [], []>} : vector<8x128xf32>, vector<128x128xf32>, vector<8x128xf32> -> vector<8x128xf32>
        %50 = arith.addf %47, %49 : vector<8x128xf32>
        %c0_31 = arith.constant 0 : index
        %c0_32 = arith.constant 0 : index
        %51 = vector.load %arg16[%c0_31, %c0_32] : memref<8x128xf32, #tpu.memory_space<vmem>>, vector<8x128xf32>
        tpu.vector_store %arg16[%c0_31, %c0_32], %50 {strides = array<i32>} : memref<8x128xf32, #tpu.memory_space<vmem>>, vector<8x128xf32>,
      } else {
      }
      %c2_i32_23 = arith.constant 2 : i32
      %42 = arith.cmpi eq, %arg0, %c2_i32_23 : i32
      %c0_i32_24 = arith.constant 0 : i32
      %43 = arith.cmpi eq, %arg1, %c0_i32_24 : i32
      %44 = arith.andi %42, %43 : i1
      %45 = arith.extui %44 : i1 to i32
      %c0_i32_25 = arith.constant 0 : i32
      %46 = arith.cmpi ne, %45, %c0_i32_25 : i32
      scf.if %46 {
        %c0_26 = arith.constant 0 : index
        %c0_27 = arith.constant 0 : index
        %47 = vector.load %arg16[%c0_26, %c0_27] : memref<8x128xf32, #tpu.memory_space<vmem>>, vector<8x128xf32>
        %c0_28 = arith.constant 0 : index
        %c0_29 = arith.constant 0 : index
        %48 = vector.load %arg8[%c0_28, %c0_29] : memref<128x128xf32, #tpu.memory_space<vmem>>, vector<128x128xf32>
        %cst_30 = arith.constant dense<0.000000e+00> : vector<8x128xf32>
        %49 = tpu.matmul %47, %48, %cst_30 {dimension_numbers = #tpu.dot_dimension_numbers<[1], [0], [0], [1], [0, 0, 1, 1], [], []>} : vector<8x128xf32>, vector<128x128xf32>, vector<8x128xf32> -> vector<8x128xf32>
        %c0_31 = arith.constant 0 : index
        %c0_32 = arith.constant 0 : index
        %50 = vector.load %arg9[%c0_31, %c0_32] : memref<1x128xf32, #tpu.memory_space<vmem>>, vector<1x128xf32>
        %51 = vector.broadcast %50 : vector<1x128xf32> to vector<8x128xf32>
        %52 = arith.addf %49, %51 : vector<8x128xf32>
        %cst_33 = arith.constant 0.000000e+00 : f32
        %53 = vector.broadcast %cst_33 : f32 to vector<8x128xf32>
        %54 = arith.maximumf %52, %53 : vector<8x128xf32>
        %c0_34 = arith.constant 0 : index
        %c0_35 = arith.constant 0 : index
        %55 = vector.load %arg10[%c0_34, %c0_35] : memref<128x2xf32, #tpu.memory_space<vmem>>, vector<128x2xf32>
        %cst_36 = arith.constant dense<0.000000e+00> : vector<8x2xf32>
        %56 = tpu.matmul %54, %55, %cst_36 {dimension_numbers = #tpu.dot_dimension_numbers<[1], [0], [0], [1], [0, 0, 1, 1], [], []>} : vector<8x128xf32>, vector<128x2xf32>, vector<8x2xf32> -> vector<8x2xf32>
        %c0_37 = arith.constant 0 : index
        %c0_38 = arith.constant 0 : index
        %57 = vector.load %arg11[%c0_37, %c0_38] : memref<1x2xf32, #tpu.memory_space<vmem>>, vector<1x2xf32>
        %58 = vector.broadcast %57 : vector<1x2xf32> to vector<8x2xf32>
        %59 = arith.addf %56, %58 : vector<8x2xf32>
        %cst_39 = arith.constant dense<0xFF800000> : vector<8xf32>
        %60 = vector.multi_reduction <maximumf>, %59, %cst_39 [1] : vector<8x2xf32> to vector<8xf32>
        %61 = vector.shape_cast %60 : vector<8xf32> to vector<8x1xf32>
        %62 = vector.broadcast %61 : vector<8x1xf32> to vector<8x2xf32>
        %63 = arith.subf %59, %62 : vector<8x2xf32>
        %64 = math.exp %63 : vector<8x2xf32>
        %cst_40 = arith.constant dense<0.000000e+00> : vector<8xf32>
        %65 = vector.multi_reduction <add>, %64, %cst_40 [1] : vector<8x2xf32> to vector<8xf32>
        %66 = vector.shape_cast %65 : vector<8xf32> to vector<8x1xf32>
        %67 = math.log %66 : vector<8x1xf32>
        %68 = vector.broadcast %67 : vector<8x1xf32> to vector<8x2xf32>
        %69 = arith.subf %63, %68 : vector<8x2xf32>
        %c0_41 = arith.constant 0 : index
        %c0_42 = arith.constant 0 : index
        %70 = vector.load %arg12[%c0_41, %c0_42] : memref<8x2xf32, #tpu.memory_space<vmem>>, vector<8x2xf32>
        tpu.vector_store %arg12[%c0_41, %c0_42], %69 {strides = array<i32>} : memref<8x2xf32, #tpu.memory_space<vmem>>, vector<8x2xf32>,
      } else {
      }
    } else {
    }
    return
  }
  func.func @transform_0(%arg0: i32, %arg1: i32, %arg2: i32) -> (i32, i32) {
    %c0_i32 = arith.constant 0 : i32
    return %arg1, %arg2 : i32, i32
  }
  func.func @transform_1(%arg0: i32, %arg1: i32, %arg2: i32) -> (i32, i32) {
    %c0_i32 = arith.constant 0 : i32
    %c0_i32_0 = arith.constant 0 : i32
    %c0_i32_1 = arith.constant 0 : i32
    return %c0_i32, %c0_i32_0 : i32, i32
  }
  func.func @transform_2(%arg0: i32, %arg1: i32, %arg2: i32) -> (i32, i32, i32) {
    %c0_i32 = arith.constant 0 : i32
    %c0_i32_0 = arith.constant 0 : i32
    %c0_i32_1 = arith.constant 0 : i32
    return %arg0, %c0_i32, %c0_i32_0 : i32, i32, i32
  }
  func.func @transform_3(%arg0: i32, %arg1: i32, %arg2: i32) -> (i32, i32, i32) {
    %c0_i32 = arith.constant 0 : i32
    %c0_i32_0 = arith.constant 0 : i32
    %c0_i32_1 = arith.constant 0 : i32
    return %arg0, %c0_i32, %c0_i32_0 : i32, i32, i32
  }
  func.func @transform_4(%arg0: i32, %arg1: i32, %arg2: i32) -> (i32, i32) {
    %c0_i32 = arith.constant 0 : i32
    %c0_i32_0 = arith.constant 0 : i32
    return %c0_i32, %arg1 : i32, i32
  }
  func.func @transform_5(%arg0: i32, %arg1: i32, %arg2: i32) -> (i32, i32) {
    %c0_i32 = arith.constant 0 : i32
    %c0_i32_0 = arith.constant 0 : i32
    %c0_i32_1 = arith.constant 0 : i32
    return %c0_i32, %c0_i32_0 : i32, i32
  }
  func.func @transform_6(%arg0: i32, %arg1: i32, %arg2: i32) -> (i32, i32) {
    %c0_i32 = arith.constant 0 : i32
    %c0_i32_0 = arith.constant 0 : i32
    %c0_i32_1 = arith.constant 0 : i32
    return %c0_i32, %c0_i32_0 : i32, i32
  }
  func.func @transform_7(%arg0: i32, %arg1: i32, %arg2: i32) -> (i32, i32) {
    %c0_i32 = arith.constant 0 : i32
    %c0_i32_0 = arith.constant 0 : i32
    %c0_i32_1 = arith.constant 0 : i32
    return %c0_i32, %c0_i32_0 : i32, i32
  }
  func.func @transform_8(%arg0: i32, %arg1: i32, %arg2: i32) -> (i32, i32) {
    %c0_i32 = arith.constant 0 : i32
    %c0_i32_0 = arith.constant 0 : i32
    %c0_i32_1 = arith.constant 0 : i32
    return %c0_i32, %c0_i32_0 : i32, i32
  }
  func.func @transform_9(%arg0: i32, %arg1: i32, %arg2: i32) -> (i32, i32) {
    %c0_i32 = arith.constant 0 : i32
    %c0_i32_0 = arith.constant 0 : i32
    %c0_i32_1 = arith.constant 0 : i32
    return %c0_i32, %c0_i32_0 : i32, i32
  }
}

</mosaic_0001>

<bundles_post_ra>
// kernel: gcn_forward.1
= control target key start
LH: loop header
LB: loop body
LE: loop exit
PB: predicated region body
PF: predicated region fallthrough
CT: control target
= control target key end

     0   :  { %s2044_s30 = smov 0   ;;  %s2046_s10 = smov 0   ;;  %s2406_s0 = inlined_call_operand.vmem [shape: bf16[128,128], index: 0, kind: input, shape index: {}]   ;;  %s2407_s1 = inlined_call_operand.vmem [shape: bf16[128,128], index: 1, kind: input, shape index: {}]   ;;  %s2408_s2 = inlined_call_operand.vmem [shape: bf16[3,128,128], index: 2, kind: input, shape index: {}]   ;;  %s2409_s3 = inlined_call_operand.vmem [shape: f32[3,1,128], index: 3, kind: input, shape index: {}]   ;;  %s2410_s4 = inlined_call_operand.vmem [shape: f32[8,128], index: 4, kind: input, shape index: {}]   ;;  %s2411_s5 = inlined_call_operand.vmem [shape: f32[128,128], index: 5, kind: input, shape index: {}]   ;;  %s2412_s6 = inlined_call_operand.vmem [shape: f32[1,128], index: 6, kind: input, shape index: {}]   ;;  %s2413_s7 = inlined_call_operand.vmem [shape: f32[128,2], index: 7, kind: input, shape index: {}]   ;;  %s2414_s8 = inlined_call_operand.vmem [shape: f32[1,2], index: 8, kind: input, shape index: {}]   ;;  %s2415_s9 = inlined_call_operand.vmem [shape: f32[8,2], index: 9, kind: output, shape index: {}]  }
   0x1   :  { %s2048_s11 = smov 0  }
   0x2 LB: > { %s38_s12 = sadd.s32 1, %s1981_s10  ;;  %p1478_p0 = scmp.ge.s32.totalorder %s1985_s11, 1  ;;  %s1985_s11 = sphi %s2048_s11, %s19_s11   ;;  %s1981_s10 = sphi %s2046_s10, %s2417_s10   ;;  %s1977_s30 = sphi %s2044_s30, %s2416_s30  }
   0x3   : > { %p40_p1 = scmp.ge.s32.totalorder %s38_s12, 3  ;;  %p334_p2 = scmp.lt.s32.totalorder %s1985_s11, 4 }
   0x5   : > { %s2419_s12 = smov (%p40_p1, %s38_s12), 0  ;;  %p335_p3 = pnand %p1478_p0, %p334_p2 }
   0x6   : > { %p389_p4 = scmp.lt.s32.totalorder (!%p335_p3), %s1977_s30, 2  ;;  %p1481_p5 = scmp.ne.s32.totalorder (!%p335_p3), %s1977_s30, 0 }
   0x7   : > { %338 = sbr.rel (%p335_p3) target bundleno = 1740 (0x6cc), region = 56 }
   0xe   : > { %s2066_s13 = scalar_select %p389_p4, %s1977_s30, 2 }
   0xf   : > { %411 = sbr.rel (%p1481_p5) target bundleno = 22 (0x16), region = 64  ;;  %v1903_v0 = vld [vmem:[%s2407_s1] sm:$0xff] (!%p1481_p5)   ;;  %v1987_v1 = vmov (!%p1481_p5), 0.0   ;;  %v1904_v2 = vld [vmem:[%s2407_s1 + $0x8] sm:$0xff] (!%p1481_p5)   ;;  %v1905_v3 = vld [vmem:[%s2407_s1 + $0x10] sm:$0xff] (!%p1481_p5)  }
  0x10   : > { %s1514_s14 = sshll.u32 %s2066_s13, 6  ;;  %s396_s17 = scalar_lea.vmem %s2409_s3, %s2066_s13  ;;  %412 = vst [vmem:[#allocation5] sm:$0xff] (!%p1481_p5), %v1987_v1  ;;  %477 = vst [vmem:[#allocation2] sm:$0xff] (!%p1481_p5), %v1903_v0  ;;  %v1906_v4 = vld [vmem:[%s2407_s1 + $0x18] sm:$0xff] (!%p1481_p5)   ;;  %v1907_v5 = vld [vmem:[%s2407_s1 + $0x20] sm:$0xff] (!%p1481_p5)  }
  0x11   : > { %s2076_s20 = scalar_lea.vmem %s2408_s2, %s1514_s14  ;;  %478 = vst [vmem:[#allocation2 + $0x8] sm:$0xff] (!%p1481_p5), %v1904_v2  ;;  %479 = vst [vmem:[#allocation2 + $0x10] sm:$0xff] (!%p1481_p5), %v1905_v3  ;;  %v1908_v6 = vld [vmem:[%s2407_s1 + $0x28] sm:$0xff] (!%p1481_p5)   ;;  %v1909_v7 = vld [vmem:[%s2407_s1 + $0x30] sm:$0xff] (!%p1481_p5)  }
  0x12   : > { %480 = vst [vmem:[#allocation2 + $0x18] sm:$0xff] (!%p1481_p5), %v1906_v4  ;;  %481 = vst [vmem:[#allocation2 + $0x20] sm:$0xff] (!%p1481_p5), %v1907_v5  ;;  %v1910_v8 = vld [vmem:[%s2407_s1 + $0x38] sm:$0xff] (!%p1481_p5)  }
  0x13   : > { %482 = vst [vmem:[#allocation2 + $0x28] sm:$0xff] (!%p1481_p5), %v1908_v6  ;;  %483 = vst [vmem:[#allocation2 + $0x30] sm:$0xff] (!%p1481_p5), %v1909_v7 }
  0x14   : > { %484 = vst [vmem:[#allocation2 + $0x38] sm:$0xff] (!%p1481_p5), %v1910_v8 }
  0x16 PF: > { %p1490_p6 = scmp.le.s32.totalorder %s1977_s30, 0 }
  0x17   : > { %v1911_v9 = vld [vmem:[%s2076_s20] sm:$0xff] (!%p1490_p6)   ;;  %v1912_v10 = vld [vmem:[%s2076_s20 + $0x8] sm:$0xff] (!%p1490_p6)   ;;  %v1913_v11 = vld [vmem:[%s2076_s20 + $0x10] sm:$0xff] (!%p1490_p6)  }
  0x18   : > { %488 = sbr.rel (%p1490_p6) target bundleno = 282 (0x11a), region = 68  ;;  %1599 = vmatprep.subr.bf16.mxu0 (!%p1490_p6), %v1911_v9  ;;  %1840 = vmatprep.subr.bf16.mxu1 (!%p1490_p6), %v1911_v9  ;;  %v1914_v12 = vld [vmem:[%s2076_s20 + $0x18] sm:$0xff] (!%p1490_p6)   ;;  %v489_v13 = vld [vmem:[#allocation3] sm:$0xff] (!%p1490_p6)  ;;  %v490_v14 = vld [vmem:[#allocation3 + $0x8] sm:$0xff] (!%p1490_p6) }
  0x19   : > { %1600 = vmatpush3.bf16.msra.mxu0 (!%p1490_p6), %v1911_v9  ;;  %1848 = vmatpush3.bf16.msra.mxu1 (!%p1490_p6), %v1911_v9  ;;  %v497_v15 = vld [vmem:[#allocation3 + $0x40] sm:$0xff] (!%p1490_p6)  ;;  %v505_v16 = vpack.c.bf16 (!%p1490_p6), %v490_v14, %v489_v13  ;;  %v498_v17 = vld [vmem:[#allocation3 + $0x48] sm:$0xff] (!%p1490_p6)  ;;  %v1917_v21 = vld [vmem:[%s2076_s20 + $0x30] sm:$0xff] (!%p1490_p6)  }
  0x1a   : > { %1601 = vmatprep.subr.bf16.mxu0 (!%p1490_p6), %v1912_v10  ;;  %1841 = vmatprep.subr.bf16.mxu1 (!%p1490_p6), %v1912_v10  ;;  %v509_v18 = vpack.c.bf16 (!%p1490_p6), %v498_v17, %v497_v15  ;;  %v1915_v19 = vld [vmem:[%s2076_s20 + $0x20] sm:$0xff] (!%p1490_p6)   ;;  %v1916_v20 = vld [vmem:[%s2076_s20 + $0x28] sm:$0xff] (!%p1490_p6)   ;;  %v1918_v22 = vld [vmem:[%s2076_s20 + $0x38] sm:$0xff] (!%p1490_p6)  }
  0x1b   : > { %1615 = vmatprep.mubr.bf16.mxu0 (!%p1490_p6), %v505_v16  ;;  %v491_v23 = vld [vmem:[#allocation3 + $0x10] sm:$0xff] (!%p1490_p6)  ;;  %v492_v24 = vld [vmem:[#allocation3 + $0x18] sm:$0xff] (!%p1490_p6)  ;;  %v493_v27 = vld [vmem:[#allocation3 + $0x20] sm:$0xff] (!%p1490_p6) }
  0x1c   : > { %1623 = vmatprep.mubr.bf16.mxu1 (!%p1490_p6), %v509_v18  ;;  %v499_v25 = vld [vmem:[#allocation3 + $0x50] sm:$0xff] (!%p1490_p6)  ;;  %v500_v26 = vld [vmem:[#allocation3 + $0x58] sm:$0xff] (!%p1490_p6)  ;;  %v494_v28 = vld [vmem:[#allocation3 + $0x28] sm:$0xff] (!%p1490_p6)  ;;  %v506_v31 = vpack.c.bf16 (!%p1490_p6), %v492_v24, %v491_v23 }
  0x1d   : > { %1602 = vmatpush3.bf16.msra.mxu0 (!%p1490_p6), %v1912_v10  ;;  %1849 = vmatpush3.bf16.msra.mxu1 (!%p1490_p6), %v1912_v10  ;;  %v501_v29 = vld [vmem:[#allocation3 + $0x60] sm:$0xff] (!%p1490_p6)  ;;  %v502_v30 = vld [vmem:[#allocation3 + $0x68] sm:$0xff] (!%p1490_p6)  ;;  %v510_v32 = vpack.c.bf16 (!%p1490_p6), %v500_v26, %v499_v25  ;;  %v507_v33 = vpack.c.bf16 (!%p1490_p6), %v494_v28, %v493_v27  ;;  %v495_v35 = vld [vmem:[#allocation3 + $0x30] sm:$0xff] (!%p1490_p6) }
  0x1e   : > { %1603 = vmatprep.subr.bf16.mxu0 (!%p1490_p6), %v1913_v11  ;;  %1842 = vmatprep.subr.bf16.mxu1 (!%p1490_p6), %v1913_v11  ;;  %v511_v34 = vpack.c.bf16 (!%p1490_p6), %v502_v30, %v501_v29  ;;  %v496_v36 = vld [vmem:[#allocation3 + $0x38] sm:$0xff] (!%p1490_p6)  ;;  %v503_v37 = vld [vmem:[#allocation3 + $0x70] sm:$0xff] (!%p1490_p6) }
  0x1f   : > { %v504_v38 = vld [vmem:[#allocation3 + $0x78] sm:$0xff]  ;;  %v508_v39 = vpack.c.bf16 %v496_v36, %v495_v35 }
  0x20   : > { %v512_v40 = vpack.c.bf16 %v504_v38, %v503_v37 }
  0x21   : > { %1604 = vmatpush3.bf16.msra.mxu0 %v1913_v11  ;;  %1850 = vmatpush3.bf16.msra.mxu1 %v1913_v11 }
  0x22   : > { %1605 = vmatprep.subr.bf16.mxu0 %v1914_v12  ;;  %1843 = vmatprep.subr.bf16.mxu1 %v1914_v12 }
  0x25   : > { %1606 = vmatpush3.bf16.msra.mxu0 %v1914_v12  ;;  %1851 = vmatpush3.bf16.msra.mxu1 %v1914_v12 }
  0x26   : > { %1607 = vmatprep.subr.bf16.mxu0 %v1915_v19  ;;  %1844 = vmatprep.subr.bf16.mxu1 %v1915_v19 }
  0x29   : > { %1608 = vmatpush3.bf16.msra.mxu0 %v1915_v19  ;;  %1852 = vmatpush3.bf16.msra.mxu1 %v1915_v19 }
  0x2a   : > { %1609 = vmatprep.subr.bf16.mxu0 %v1916_v20  ;;  %1845 = vmatprep.subr.bf16.mxu1 %v1916_v20 }
  0x2d   : > { %1610 = vmatpush3.bf16.msra.mxu0 %v1916_v20  ;;  %1853 = vmatpush3.bf16.msra.mxu1 %v1916_v20 }
  0x2e   : > { %1611 = vmatprep.subr.bf16.mxu0 %v1917_v21  ;;  %1846 = vmatprep.subr.bf16.mxu1 %v1917_v21 }
  0x31   : > { %1612 = vmatpush3.bf16.msra.mxu0 %v1917_v21  ;;  %1854 = vmatpush3.bf16.msra.mxu1 %v1917_v21 }
  0x32   : > { %1613 = vmatprep.subr.bf16.mxu0 %v1918_v22  ;;  %1847 = vmatprep.subr.bf16.mxu1 %v1918_v22 }
  0x35   : > { %1614 = vmatpush3.bf16.msra.mxu0 %v1918_v22  ;;  %1855 = vmatpush3.bf16.msra.mxu1 %v1918_v22 }
  0x38   : > { %1616 = vmatmul.mubr.bf16.vlgmr.msra.gmra.mrb[0].mxu0 %v506_v31  ;;  %1624 = vmatmul.mubr.bf16.vlgmr.msra.gmra.mrb[0].mxu1 %v510_v32 }
  0x39   : > { %1619 = vmatprep.mubr.bf16.mxu0 %v507_v33  ;;  %1627 = vmatprep.mubr.bf16.mxu1 %v511_v34 }
  0x40   : > { %1620 = vmatmul.mubr.bf16.gmra.mrb[4].mxu0 %v508_v39  ;;  %1628 = vmatmul.mubr.bf16.gmra.mrb[4].mxu1 %v512_v40 }
 0x10b   : > { %v1617_v41 = vpop.f32.mrb[0].mxu0  ;;  %v1625_v42 = vpop.f32.mrb[0].mxu1 }
 0x10c   : > { %v611_v43 = vpop.f32.mrb[1].mxu0  ;;  %v643_v44 = vpop.f32.mrb[1].mxu1 }
 0x10d   : > { %v1618_v45 = vpop.f32.mrb[2].mxu0  ;;  %v1626_v46 = vpop.f32.mrb[2].mxu1 }
 0x10e   : > { %v675_v47 = vpack.c.bf16 %v1618_v45, %v1617_v41  ;;  %v679_v48 = vpack.c.bf16 %v1626_v46, %v1625_v42  ;;  %v614_v49 = vpop.f32.mrb[3].mxu0  ;;  %v646_v50 = vpop.f32.mrb[3].mxu1 }
 0x10f   : > { %v674_v51 = vpack.c.bf16 %v614_v49, %v611_v43  ;;  %v678_v52 = vpack.c.bf16 %v646_v50, %v643_v44 }
 0x110   : > { %683 = vst [vmem:[#allocation2 + $0x8] sm:$0xff] %v675_v47  ;;  %687 = vst [vmem:[#allocation2 + $0x28] sm:$0xff] %v679_v48 }
 0x111   : > { %682 = vst [vmem:[#allocation2] sm:$0xff] %v674_v51  ;;  %686 = vst [vmem:[#allocation2 + $0x20] sm:$0xff] %v678_v52 }
 0x113   : > { %v1621_v53 = vpop.f32.mrb[4].mxu0  ;;  %v1629_v54 = vpop.f32.mrb[4].mxu1 }
 0x114   : > { %v627_v55 = vpop.f32.mrb[5].mxu0  ;;  %v659_v56 = vpop.f32.mrb[5].mxu1 }
 0x115   : > { %v1622_v57 = vpop.f32.mrb[6].mxu0  ;;  %v1630_v58 = vpop.f32.mrb[6].mxu1 }
 0x116   : > { %v677_v59 = vpack.c.bf16 %v1622_v57, %v1621_v53  ;;  %v681_v60 = vpack.c.bf16 %v1630_v58, %v1629_v54  ;;  %v630_v61 = vpop.f32.mrb[7].mxu0  ;;  %v662_v62 = vpop.f32.mrb[7].mxu1 }
 0x117   : > { %v676_v63 = vpack.c.bf16 %v630_v61, %v627_v55  ;;  %v680_v0 = vpack.c.bf16 %v662_v62, %v659_v56 }
 0x118   : > { %685 = vst [vmem:[#allocation2 + $0x18] sm:$0xff] %v677_v59  ;;  %689 = vst [vmem:[#allocation2 + $0x38] sm:$0xff] %v681_v60 }
 0x119   : > { %684 = vst [vmem:[#allocation2 + $0x10] sm:$0xff] %v676_v63  ;;  %688 = vst [vmem:[#allocation2 + $0x30] sm:$0xff] %v680_v0 }
 0x11a PF: > { %v714_v1 = vld [vmem:[#allocation2] sm:$0xff]  ;;  %v715_v2 = vld [vmem:[#allocation2 + $0x8] sm:$0xff]  ;;  %v1923_v13 = vld [vmem:[%s2406_s0 + $0x10] sm:$0xff]   ;;  %p1103_p7 = scmp.eq.s32.totalorder %s1977_s30, 2  ;;  %p1508_p8 = scmp.ne.s32.totalorder %s1977_s30, 2 }
 0x11b   : > { %1631 = vmatprep.subr.bf16.mxu0 %v714_v1  ;;  %1856 = vmatprep.subr.bf16.mxu1 %v714_v1  ;;  %v1919_v4 = vld [vmem:[%s2406_s0] sm:$0xff]   ;;  %v719_v8 = vld [vmem:[#allocation2 + $0x28] sm:$0xff]  ;;  %v1925_v14 = vld [vmem:[%s2406_s0 + $0x30] sm:$0xff]   ;;  %vm1989_vm0 = vmmov (!%p1508_p8), 0  }
 0x11c   : > { %1632 = vmatpush3.bf16.msra.mxu0 %v714_v1  ;;  %1864 = vmatpush3.bf16.msra.mxu1 %v714_v1  ;;  %v1920_v5 = vld [vmem:[%s2406_s0 + $0x20] sm:$0xff]   ;;  %v1921_v11 = vld [vmem:[%s2406_s0 + $0x8] sm:$0xff]   ;;  %v1924_v15 = vld [vmem:[%s2406_s0 + $0x18] sm:$0xff]  }
 0x11d   : > { %1633 = vmatprep.subr.bf16.mxu0 %v715_v2  ;;  %1857 = vmatprep.subr.bf16.mxu1 %v715_v2  ;;  %v718_v7 = vld [vmem:[#allocation2 + $0x20] sm:$0xff]  ;;  %v1922_v12 = vld [vmem:[%s2406_s0 + $0x28] sm:$0xff]   ;;  %v1926_v16 = vld [vmem:[%s2406_s0 + $0x38] sm:$0xff]  }
 0x11e   : > { %1647 = vmatprep.mubr.bf16.mxu0 %v1919_v4  ;;  %1655 = vmatprep.mubr.bf16.mxu1 %v1920_v5  ;;  %v1507_v17 = vld [vmem:[%s396_s17] ss:$0 sm:$0xff] }
 0x11f   : > { %v717_v6 = vld [vmem:[#allocation2 + $0x18] sm:$0xff] }
 0x120   : > { %v716_v3 = vld [vmem:[#allocation2 + $0x10] sm:$0xff]  ;;  %1634 = vmatpush3.bf16.msra.mxu0 %v715_v2  ;;  %1865 = vmatpush3.bf16.msra.mxu1 %v715_v2  ;;  %v721_v10 = vld [vmem:[#allocation2 + $0x38] sm:$0xff] }
 0x121   : > { %1635 = vmatprep.subr.bf16.mxu0 %v716_v3  ;;  %1858 = vmatprep.subr.bf16.mxu1 %v716_v3  ;;  %v720_v9 = vld [vmem:[#allocation2 + $0x30] sm:$0xff] }
 0x124   : > { %1636 = vmatpush3.bf16.msra.mxu0 %v716_v3  ;;  %1866 = vmatpush3.bf16.msra.mxu1 %v716_v3 }
 0x125   : > { %1637 = vmatprep.subr.bf16.mxu0 %v717_v6  ;;  %1859 = vmatprep.subr.bf16.mxu1 %v717_v6 }
 0x128   : > { %1638 = vmatpush3.bf16.msra.mxu0 %v717_v6  ;;  %1867 = vmatpush3.bf16.msra.mxu1 %v717_v6 }
 0x129   : > { %1639 = vmatprep.subr.bf16.mxu0 %v718_v7  ;;  %1860 = vmatprep.subr.bf16.mxu1 %v718_v7 }
 0x12c   : > { %1640 = vmatpush3.bf16.msra.mxu0 %v718_v7  ;;  %1868 = vmatpush3.bf16.msra.mxu1 %v718_v7 }
 0x12d   : > { %1641 = vmatprep.subr.bf16.mxu0 %v719_v8  ;;  %1861 = vmatprep.subr.bf16.mxu1 %v719_v8 }
 0x130   : > { %1642 = vmatpush3.bf16.msra.mxu0 %v719_v8  ;;  %1869 = vmatpush3.bf16.msra.mxu1 %v719_v8 }
 0x131   : > { %1643 = vmatprep.subr.bf16.mxu0 %v720_v9  ;;  %1862 = vmatprep.subr.bf16.mxu1 %v720_v9 }
 0x134   : > { %1644 = vmatpush3.bf16.msra.mxu0 %v720_v9  ;;  %1870 = vmatpush3.bf16.msra.mxu1 %v720_v9 }
 0x135   : > { %1645 = vmatprep.subr.bf16.mxu0 %v721_v10  ;;  %1863 = vmatprep.subr.bf16.mxu1 %v721_v10 }
 0x138   : > { %1646 = vmatpush3.bf16.msra.mxu0 %v721_v10  ;;  %1871 = vmatpush3.bf16.msra.mxu1 %v721_v10 }
 0x13b   : > { %1648 = vmatmul.mubr.bf16.vlgmr.msra.gmra.mrb[0].mxu0 %v1921_v11  ;;  %1656 = vmatmul.mubr.bf16.vlgmr.msra.gmra.mrb[0].mxu1 %v1922_v12 }
 0x13c   : > { %1651 = vmatprep.mubr.bf16.mxu0 %v1923_v13  ;;  %1659 = vmatprep.mubr.bf16.mxu1 %v1925_v14 }
 0x143   : > { %1652 = vmatmul.mubr.bf16.gmra.mrb[4].mxu0 %v1924_v15  ;;  %1660 = vmatmul.mubr.bf16.gmra.mrb[4].mxu1 %v1926_v16 }
 0x20e   : > { %v1649_v18 = vpop.f32.mrb[0].mxu0  ;;  %v1657_v19 = vpop.f32.mrb[0].mxu1 }
 0x20f   : > { %v2141_v20 = vadd.f32 %v1649_v18, %v1507_v17  ;;  %v2143_v21 = vadd.f32 %v1657_v19, %v1507_v17  ;;  %v836_v22 = vpop.f32.mrb[1].mxu0  ;;  %v868_v23 = vpop.f32.mrb[1].mxu1 }
 0x210   : > { %v1650_v24 = vpop.f32.mrb[2].mxu0  ;;  %v1658_v25 = vpop.f32.mrb[2].mxu1  ;;  %v2145_v26 = vadd.f32 %v1507_v17, %v836_v22  ;;  %v2153_v32 = vadd.f32 %v1507_v17, %v868_v23 }
 0x211   : > { %v2147_v27 = vadd.f32 %v1650_v24, %v1507_v17  ;;  %v839_v28 = vpop.f32.mrb[3].mxu0  ;;  %v871_v29 = vpop.f32.mrb[3].mxu1  ;;  %v983_v30 = vmul.f32 %v2143_v21, %v2143_v21  ;;  %v975_v31 = vmul.f32 %v2141_v20, %v2141_v20  ;;  %v2155_v33 = vadd.f32 %v1658_v25, %v1507_v17 }
 0x212   : > { %v973_v34 = vmul.f32 %v2145_v26, %v2145_v26  ;;  %v2161_v42 = vadd.f32 %v1507_v17, %v839_v28  ;;  %v2163_v43 = vadd.f32 %v1507_v17, %v871_v29  ;;  %v981_v44 = vmul.f32 %v2153_v32, %v2153_v32 }
 0x213   : > { %1009 = vadd.xlane.f32.xlu0 %v983_v30  ;;  %993 = vadd.xlane.f32.xlu1 %v975_v31  ;;  %v976_v35 = vmul.f32 %v2147_v27, %v2147_v27  ;;  %v984_v45 = vmul.f32 %v2155_v33, %v2155_v33 }
 0x214   : > { %v982_v50 = vmul.f32 %v2163_v43, %v2163_v43  ;;  %v974_v51 = vmul.f32 %v2161_v42, %v2161_v42 }
 0x216   : > { %v1653_v36 = vpop.f32.mrb[4].mxu0  ;;  %v1661_v37 = vpop.f32.mrb[4].mxu1 }
 0x217   : > { %989 = vadd.xlane.f32.xlu0 %v973_v34  ;;  %995 = vadd.xlane.f32.xlu1 %v976_v35  ;;  %v852_v38 = vpop.f32.mrb[5].mxu0  ;;  %v884_v39 = vpop.f32.mrb[5].mxu1  ;;  %v2169_v48 = vadd.f32 %v1653_v36, %v1507_v17  ;;  %v2193_v60 = vadd.f32 %v1661_v37, %v1507_v17 }
 0x218   : > { %v1654_v40 = vpop.f32.mrb[6].mxu0  ;;  %v1662_v41 = vpop.f32.mrb[6].mxu1  ;;  %v2177_v52 = vadd.f32 %v1507_v17, %v852_v38  ;;  %v2185_v56 = vadd.f32 %v1507_v17, %v884_v39 }
 0x219   : > { %v855_v46 = vpop.f32.mrb[7].mxu0  ;;  %v887_v47 = vpop.f32.mrb[7].mxu1  ;;  %v2171_v49 = vadd.f32 %v1654_v40, %v1507_v17  ;;  %v979_v54 = vmul.f32 %v2169_v48, %v2169_v48  ;;  %v2195_v61 = vadd.f32 %v1662_v41, %v1507_v17  ;;  %v987_v0 = vmul.f32 %v2193_v60, %v2193_v60 }
 0x21a   : > { %v2179_v53 = vadd.f32 %v1507_v17, %v855_v46  ;;  %v2187_v57 = vadd.f32 %v1507_v17, %v887_v47  ;;  %v977_v58 = vmul.f32 %v2177_v52, %v2177_v52  ;;  %v985_v62 = vmul.f32 %v2185_v56, %v2185_v56 }
 0x21b   : > { %1005 = vadd.xlane.f32.xlu0 %v981_v44  ;;  %1011 = vadd.xlane.f32.xlu1 %v984_v45  ;;  %v980_v55 = vmul.f32 %v2171_v49, %v2171_v49  ;;  %v988_v1 = vmul.f32 %v2195_v61, %v2195_v61 }
 0x21c   : > { %v978_v59 = vmul.f32 %v2179_v53, %v2179_v53  ;;  %v986_v63 = vmul.f32 %v2187_v57, %v2187_v57 }
 0x21f   : > { %1007 = vadd.xlane.f32.xlu1 %v982_v50  ;;  %991 = vadd.xlane.f32.xlu0 %v974_v51 }
 0x223   : > { %1001 = vadd.xlane.f32.xlu0 %v979_v54  ;;  %1003 = vadd.xlane.f32.xlu1 %v980_v55 }
 0x227   : > { %997 = vadd.xlane.f32.xlu0 %v977_v58  ;;  %999 = vadd.xlane.f32.xlu1 %v978_v59 }
 0x22b   : > { %1013 = vadd.xlane.f32.xlu0 %v985_v62  ;;  %1015 = vadd.xlane.f32.xlu1 %v986_v63 }
 0x22f   : > { %1017 = vadd.xlane.f32.xlu0 %v987_v0  ;;  %1019 = vadd.xlane.f32.xlu1 %v988_v1 }
 0x2a0   : > { %v1010_v2 = vpop.xlane.xlu0 %1009  ;;  %v994_v3 = vpop.xlane.xlu1 %993 }
 0x2a1   : > { %v1031_v4 = vmax.f32 %v1010_v2, 1e-24  ;;  %v1023_v5 = vmax.f32 %v994_v3, 1e-24 }
 0x2a3   : > { %1927 = vrsqrt.f32 %v1031_v4 }
 0x2a4   : > { %1929 = vrsqrt.f32 %v1023_v5  ;;  %v990_v6 = vpop.xlane.xlu0 %989  ;;  %v996_v7 = vpop.xlane.xlu1 %995 }
 0x2a5   : > { %v1021_v8 = vmax.f32 %v990_v6, 1e-24  ;;  %v1024_v9 = vmax.f32 %v996_v7, 1e-24 }
 0x2a7   : > { %1931 = vrsqrt.f32 %v1021_v8 }
 0x2a8   : > { %1933 = vrsqrt.f32 %v1024_v9  ;;  %v1006_v10 = vpop.xlane.xlu0 %1005  ;;  %v1012_v11 = vpop.xlane.xlu1 %1011 }
 0x2a9   : > { %v1029_v12 = vmax.f32 %v1006_v10, 1e-24  ;;  %v1032_v13 = vmax.f32 %v1012_v11, 1e-24 }
 0x2ab   : > { %1935 = vrsqrt.f32 %v1029_v12 }
 0x2ac   : > { %1937 = vrsqrt.f32 %v1032_v13  ;;  %v1008_v14 = vpop.xlane.xlu1 %1007  ;;  %v992_v15 = vpop.xlane.xlu0 %991 }
 0x2ad   : > { %v1928_v16 = vpop.eup %1927  ;;  %v1030_v17 = vmax.f32 %v1008_v14, 1e-24  ;;  %v1022_v18 = vmax.f32 %v992_v15, 1e-24 }
 0x2ae   : > { %v1930_v19 = vpop.eup %1929  ;;  %v2207_v22 = vmul.f32 %v1928_v16, %v2143_v21 }
 0x2af   : > { %v2210_v23 = vmul.f32 %v1930_v19, %v2141_v20  ;;  %1939 = vrsqrt.f32 %v1030_v17 }
 0x2b0   : > { %v1079_v24 = vmax.f32 %v2207_v22, 0.0  ;;  %1941 = vrsqrt.f32 %v1022_v18  ;;  %v1002_v25 = vpop.xlane.xlu0 %1001  ;;  %v1004_v28 = vpop.xlane.xlu1 %1003 }
 0x2b1   : > { %v1932_v29 = vpop.eup %1931  ;;  %v1071_v30 = vmax.f32 %v2210_v23, 0.0  ;;  %v1027_v31 = vmax.f32 %v1002_v25, 1e-24  ;;  %v1028_v34 = vmax.f32 %v1004_v28, 1e-24 }
 0x2b2   : > { %v1934_v35 = vpop.eup %1933  ;;  %1097 = vst [vmem:[#allocation3 + $0x50] sm:$0xff] %v1079_v24  ;;  %v2217_v21 = vmul.f32 %v1932_v29, %v2145_v26 }
 0x2b3   : > { %1089 = vst [vmem:[#allocation3 + $0x10] sm:$0xff] %v1071_v30  ;;  %v2222_v20 = vmul.f32 %v1934_v35, %v2147_v27  ;;  %1943 = vrsqrt.f32 %v1027_v31 }
 0x2b4   : > { %v1069_v36 = vmax.f32 %v2217_v21, 0.0  ;;  %1945 = vrsqrt.f32 %v1028_v34  ;;  %v998_v37 = vpop.xlane.xlu0 %997  ;;  %v1000_v38 = vpop.xlane.xlu1 %999  ;;  %v1108_v21 = vld [vmem:[%s2410_s4] sm:$0xff] (!%p1508_p8) }
 0x2b5   : > { %v1936_v39 = vpop.eup %1935  ;;  %v1072_v40 = vmax.f32 %v2222_v20, 0.0  ;;  %v1025_v41 = vmax.f32 %v998_v37, 1e-24  ;;  %v1026_v44 = vmax.f32 %v1000_v38, 1e-24  ;;  %v1107_v20 = vld [vmem:[#allocation5] sm:$0xff] (!%p1508_p8) }
 0x2b6   : > { %v1938_v45 = vpop.eup %1937  ;;  %1087 = vst [vmem:[#allocation3] sm:$0xff] %v1069_v36  ;;  %v2229_v26 = vmul.f32 %v1936_v39, %v2153_v32 }
 0x2b7   : > { %1090 = vst [vmem:[#allocation3 + $0x18] sm:$0xff] %v1072_v40  ;;  %v2234_v27 = vmul.f32 %v1938_v45, %v2155_v33  ;;  %1947 = vrsqrt.f32 %v1025_v41 }
 0x2b8   : > { %v1077_v46 = vmax.f32 %v2229_v26, 0.0  ;;  %1949 = vrsqrt.f32 %v1026_v44  ;;  %v1014_v47 = vpop.xlane.xlu0 %1013  ;;  %v1016_v50 = vpop.xlane.xlu1 %1015 }
 0x2b9   : > { %v1940_v51 = vpop.eup %1939  ;;  %v1080_v54 = vmax.f32 %v2234_v27, 0.0  ;;  %v1033_v55 = vmax.f32 %v1014_v47, 1e-24  ;;  %v1034_v58 = vmax.f32 %v1016_v50, 1e-24 }
 0x2ba   : > { %v1942_v59 = vpop.eup %1941  ;;  %1095 = vst [vmem:[#allocation3 + $0x40] sm:$0xff] %v1077_v46  ;;  %v2241_v32 = vmul.f32 %v1940_v51, %v2163_v43 }
 0x2bb   : > { %1098 = vst [vmem:[#allocation3 + $0x58] sm:$0xff] %v1080_v54  ;;  %v1054_v33 = vmul.f32 %v1942_v59, %v2161_v42  ;;  %1951 = vrsqrt.f32 %v1033_v55  ;;  %v1784_v23 = vpack.c.bf16 (!%p1508_p8), %v1080_v54, %v1079_v24 }
 0x2bc   : > { %v1078_v62 = vmax.f32 %v2241_v32, 0.0  ;;  %1953 = vrsqrt.f32 %v1034_v58  ;;  %v1018_v63 = vpop.xlane.xlu0 %1017  ;;  %v1020_v0 = vpop.xlane.xlu1 %1019 }
 0x2bd   : > { %v1944_v1 = vpop.eup %1943  ;;  %v1070_v2 = vmax.f32 %v1054_v33, 0.0  ;;  %v1035_v3 = vmax.f32 %v1018_v63, 1e-24  ;;  %v1036_v4 = vmax.f32 %v1020_v0, 1e-24 }
 0x2be   : > { %v1946_v5 = vpop.eup %1945  ;;  %1096 = vst [vmem:[#allocation3 + $0x48] sm:$0xff] %v1078_v62  ;;  %v1059_v43 = vmul.f32 %v1944_v1, %v2169_v48  ;;  %v1781_v34 = vpack.c.bf16 (!%p1508_p8), %v1078_v62, %v1077_v46 }
 0x2bf   : > { %1088 = vst [vmem:[#allocation3 + $0x8] sm:$0xff] %v1070_v2  ;;  %v1060_v6 = vmul.f32 %v1946_v5, %v2171_v49  ;;  %1955 = vrsqrt.f32 %v1035_v3 }
 0x2c0   : > { %v1075_v7 = vmax.f32 %v1059_v43, 0.0  ;;  %1957 = vrsqrt.f32 %v1036_v4 }
 0x2c1   : > { %v1948_v42 = vpop.eup %1947  ;;  %v1076_v8 = vmax.f32 %v1060_v6, 0.0 }
 0x2c2   : > { %v1950_v9 = vpop.eup %1949  ;;  %1093 = vst [vmem:[#allocation3 + $0x30] sm:$0xff] %v1075_v7  ;;  %v1057_v10 = vmul.f32 %v1948_v42, %v2177_v52 }
 0x2c3   : > { %1094 = vst [vmem:[#allocation3 + $0x38] sm:$0xff] %v1076_v8  ;;  %v1058_v11 = vmul.f32 %v1950_v9, %v2179_v53  ;;  %v1778_v31 = vpack.c.bf16 (!%p1508_p8), %v1076_v8, %v1075_v7 }
 0x2c4   : > { %v1073_v12 = vmax.f32 %v1057_v10, 0.0 }
 0x2c5   : > { %v1952_v13 = vpop.eup %1951  ;;  %v1074_v14 = vmax.f32 %v1058_v11, 0.0 }
 0x2c6   : > { %v1954_v15 = vpop.eup %1953  ;;  %1091 = vst [vmem:[#allocation3 + $0x20] sm:$0xff] %v1073_v12  ;;  %v1065_v48 = vmul.f32 %v1952_v13, %v2185_v56  ;;  %v1769_v56 = vpack.c.bf16 (!%p1508_p8), %v1070_v2, %v1069_v36 }
 0x2c7   : > { %1092 = vst [vmem:[#allocation3 + $0x28] sm:$0xff] %v1074_v14  ;;  %v1066_v49 = vmul.f32 %v1954_v15, %v2187_v57  ;;  %v1988_v57 = vmov (!%p1508_p8), 0.0|0.0   ;;  %v1775_v29 = vpack.c.bf16 (!%p1508_p8), %v1074_v14, %v1073_v12 }
 0x2c8   : > { %v1081_v16 = vmax.f32 %v1065_v48, 0.0  ;;  %1768 = vmatprep.subr.bf16.mxu0 (!%p1508_p8), %v1988_v57 }
 0x2c9   : > { %v1956_v17 = vpop.eup %1955  ;;  %v1082_v18 = vmax.f32 %v1066_v49, 0.0  ;;  %1106 = sbr.rel (%p1508_p8) target bundleno = 959 (0x3bf), region = 80  ;;  %1770 = vmatpush3.bf16.msra.mxu0 (!%p1508_p8), %v1769_v56 }
 0x2ca   : > { %v1958_v19 = vpop.eup %1957  ;;  %1099 = vst [vmem:[#allocation3 + $0x60] sm:$0xff] %v1081_v16  ;;  %v1067_v52 = vmul.f32 %v1956_v17, %v2193_v60  ;;  %v1772_v60 = vpack.c.bf16 (!%p1508_p8), %v1072_v40, %v1071_v30  ;;  %1771 = vmatprep.subr.bf16.mxu0 (!%p1508_p8), %v1988_v57 }
 0x2cb   : > { %1100 = vst [vmem:[#allocation3 + $0x68] sm:$0xff] %v1082_v18  ;;  %v1068_v53 = vmul.f32 %v1958_v19, %v2195_v61  ;;  %v1990_v61 = vmov (!%p1508_p8), 0.0   ;;  %v1787_v30 = vpack.c.bf16 (!%p1508_p8), %v1082_v18, %v1081_v16 }
 0x2cc   : > { %v1083_v25 = vmax.f32 %v1067_v52, 0.0  ;;  %1695 = vmatprep.mubr.msk.f32.mxu0 (!%p1508_p8), %vm1989_vm0, %v1990_v61 }
 0x2cd   : > { %v1084_v28 = vmax.f32 %v1068_v53, 0.0  ;;  %1773 = vmatpush3.bf16.msra.mxu0 (!%p1508_p8), %v1772_v60 }
 0x2ce   : > { %1101 = vst [vmem:[#allocation3 + $0x70] sm:$0xff] %v1083_v25  ;;  %1774 = vmatprep.subr.bf16.mxu0 (!%p1508_p8), %v1988_v57 }
 0x2cf   : > { %1102 = vst [vmem:[#allocation3 + $0x78] sm:$0xff] %v1084_v28  ;;  %v1790_v35 = vpack.c.bf16 (!%p1508_p8), %v1084_v28, %v1083_v25 }
 0x2d1   : > { %1776 = vmatpush3.bf16.msra.mxu0 %v1775_v29 }
 0x2d2   : > { %1777 = vmatprep.subr.bf16.mxu0 %v1988_v57 }
 0x2d5   : > { %1779 = vmatpush3.bf16.msra.mxu0 %v1778_v31 }
 0x2d6   : > { %1780 = vmatprep.subr.bf16.mxu0 %v1988_v57 }
 0x2d9   : > { %1782 = vmatpush3.bf16.msra.mxu0 %v1781_v34 }
 0x2da   : > { %1783 = vmatprep.subr.bf16.mxu0 %v1988_v57 }
 0x2dd   : > { %1785 = vmatpush3.bf16.msra.mxu0 %v1784_v23 }
 0x2de   : > { %1786 = vmatprep.subr.bf16.mxu0 %v1988_v57 }
 0x2e1   : > { %1788 = vmatpush3.bf16.msra.mxu0 %v1787_v30 }
 0x2e2   : > { %1789 = vmatprep.subr.bf16.mxu0 %v1988_v57 }
 0x2e5   : > { %1791 = vmatpush3.bf16.msra.mxu0 %v1790_v35 }
 0x2e8   : > { %1696 = vmatmul.mubr.f32.vlgmr.msra.gmra.mrb[0].mxu0 %v1108_v21 }
 0x3bb   : > { %v1175_v36 = vpop.f32.mrb[0].mxu0 }
 0x3bc   : > { %v1179_v37 = vadd.f32 %v1175_v36, %v1107_v20  ;;  %v1697_v22 = vpop.f32.mrb[1].mxu0 }
 0x3be   : > { %1180 = vst [vmem:[#allocation5] sm:$0xff] %v1179_v37 }
 0x3bf PF: > { %1184 = sbr.rel (!%p1103_p7) target bundleno = 1740 (0x6cc), region = 84  ;;  %v1186_v24 = vld [vmem:[%s2411_s5] sm:$0xff] (%p1103_p7)  ;;  %v1187_v38 = vld [vmem:[%s2411_s5 + $0x8] sm:$0xff] (%p1103_p7)  ;;  %v1188_v39 = vld [vmem:[%s2411_s5 + $0x10] sm:$0xff] (%p1103_p7)  ;;  %v1991_v40 = vmov (%p1103_p7), 0.0|0.0   ;;  %vm1992_vm1 = vmmov (%p1103_p7), 0  }
 0x3c0   : > { %1792 = vmatprep.subr.bf16.mxu0 (%p1103_p7), %v1991_v40  ;;  %v1793_v41 = vpack.c.bf16 (%p1103_p7), %v1187_v38, %v1186_v24  ;;  %v1189_v44 = vld [vmem:[%s2411_s5 + $0x18] sm:$0xff] (%p1103_p7)  ;;  %v1993_v45 = vmov (%p1103_p7), 0.0   ;;  %1816 = vmatprep.subr.bf16.mxu1 (%p1103_p7), %v1991_v40  ;;  %v1190_v27 = vld [vmem:[%s2411_s5 + $0x20] sm:$0xff] (%p1103_p7)  ;;  %v1191_v46 = vld [vmem:[%s2411_s5 + $0x28] sm:$0xff] (%p1103_p7)  ;;  %vm1373_vm2 = vcmask (%p1103_p7), 15360  }
 0x3c1   : > { %1730 = vmatprep.mubr.msk.f32.mxu0 (%p1103_p7), %vm1992_vm1, %v1993_v45  ;;  %1765 = vmatprep.mubr.msk.f32.mxu1 (%p1103_p7), %vm1992_vm1, %v1993_v45  ;;  %v1796_v26 = vpack.c.bf16 (%p1103_p7), %v1189_v44, %v1188_v39  ;;  %v1280_v47 = vld [vmem:[%s2413_s7] sm:$0xff] (%p1103_p7)  ;;  %v1281_v50 = vld [vmem:[%s2413_s7 + $0x8] sm:$0xff] (%p1103_p7)  ;;  %v1282_v51 = vld [vmem:[%s2413_s7 + $0x10] sm:$0xff] (%p1103_p7)  ;;  %v1799_v55 = vpack.c.bf16 (%p1103_p7), %v1191_v46, %v1190_v27 }
 0x3c2   : > { %1794 = vmatpush3.bf16.msra.mxu0 (%p1103_p7), %v1793_v41  ;;  %v1283_v54 = vld [vmem:[%s2413_s7 + $0x18] sm:$0xff] (%p1103_p7)  ;;  %v1817_v58 = vpack.c.bf16 (%p1103_p7), %v1281_v50, %v1280_v47  ;;  %v1192_v59 = vld [vmem:[%s2411_s5 + $0x30] sm:$0xff] (%p1103_p7)  ;;  %v1284_v62 = vld [vmem:[%s2413_s7 + $0x20] sm:$0xff] (%p1103_p7) }
 0x3c3   : > { %1795 = vmatprep.subr.bf16.mxu0 (%p1103_p7), %v1991_v40  ;;  %v1193_v32 = vld [vmem:[%s2411_s5 + $0x38] sm:$0xff] (%p1103_p7)  ;;  %v1820_v33 = vpack.c.bf16 (%p1103_p7), %v1283_v54, %v1282_v51  ;;  %v1285_v63 = vld [vmem:[%s2413_s7 + $0x28] sm:$0xff] (%p1103_p7)  ;;  %v1194_v1 = vld [vmem:[%s2411_s5 + $0x40] sm:$0xff] (%p1103_p7) }
 0x3c4   : > { %1818 = vmatpush3.bf16.msra.mxu1 (%p1103_p7), %v1817_v58  ;;  %v1802_v0 = vpack.c.bf16 (%p1103_p7), %v1193_v32, %v1192_v59  ;;  %v1195_v2 = vld [vmem:[%s2411_s5 + $0x48] sm:$0xff] (%p1103_p7)  ;;  %v1823_v3 = vpack.c.bf16 (%p1103_p7), %v1285_v63, %v1284_v62  ;;  %v1286_v4 = vld [vmem:[%s2413_s7 + $0x30] sm:$0xff] (%p1103_p7)  ;;  %v1287_v5 = vld [vmem:[%s2413_s7 + $0x38] sm:$0xff] (%p1103_p7) }
 0x3c5   : > { %1819 = vmatprep.subr.bf16.mxu1 (%p1103_p7), %v1991_v40  ;;  %v1805_v43 = vpack.c.bf16 (%p1103_p7), %v1195_v2, %v1194_v1  ;;  %v1196_v6 = vld [vmem:[%s2411_s5 + $0x50] sm:$0xff] (%p1103_p7)  ;;  %v1197_v7 = vld [vmem:[%s2411_s5 + $0x58] sm:$0xff] (%p1103_p7)  ;;  %v1826_v42 = vpack.c.bf16 (%p1103_p7), %v1287_v5, %v1286_v4  ;;  %v1288_v8 = vld [vmem:[%s2413_s7 + $0x40] sm:$0xff] (%p1103_p7) }
 0x3c6   : > { %1797 = vmatpush3.bf16.msra.mxu0 %v1796_v26  ;;  %v1289_v9 = vld [vmem:[%s2413_s7 + $0x48] sm:$0xff]  ;;  %v1808_v10 = vpack.c.bf16 %v1197_v7, %v1196_v6  ;;  %v1198_v11 = vld [vmem:[%s2411_s5 + $0x60] sm:$0xff]  ;;  %v1290_v14 = vld [vmem:[%s2413_s7 + $0x50] sm:$0xff] }
 0x3c7   : > { %1798 = vmatprep.subr.bf16.mxu0 %v1991_v40  ;;  %v1199_v12 = vld [vmem:[%s2411_s5 + $0x68] sm:$0xff]  ;;  %v1829_v13 = vpack.c.bf16 %v1289_v9, %v1288_v8  ;;  %v1291_v15 = vld [vmem:[%s2413_s7 + $0x58] sm:$0xff]  ;;  %v1200_v49 = vld [vmem:[%s2411_s5 + $0x70] sm:$0xff] }
 0x3c8   : > { %1821 = vmatpush3.bf16.msra.mxu1 %v1820_v33  ;;  %v1811_v48 = vpack.c.bf16 %v1199_v12, %v1198_v11  ;;  %v1201_v16 = vld [vmem:[%s2411_s5 + $0x78] sm:$0xff]  ;;  %v1832_v17 = vpack.c.bf16 %v1291_v15, %v1290_v14  ;;  %v1292_v18 = vld [vmem:[%s2413_s7 + $0x60] sm:$0xff]  ;;  %v1293_v19 = vld [vmem:[%s2413_s7 + $0x68] sm:$0xff] }
 0x3c9   : > { %1822 = vmatprep.subr.bf16.mxu1 %v1991_v40  ;;  %v1814_v52 = vpack.c.bf16 %v1201_v16, %v1200_v49  ;;  %v1835_v53 = vpack.c.bf16 %v1293_v19, %v1292_v18  ;;  %v1185_v25 = vld [vmem:[#allocation5] sm:$0xff]  ;;  %v1294_v28 = vld [vmem:[%s2413_s7 + $0x70] sm:$0xff]  ;;  %v1295_v56 = vld [vmem:[%s2413_s7 + $0x78] sm:$0xff] }
 0x3ca   : > { %1800 = vmatpush3.bf16.msra.mxu0 %v1799_v55  ;;  %v1838_v57 = vpack.c.bf16 %v1295_v56, %v1294_v28  ;;  %v1510_v60 = vld [vmem:[%s2412_s6] ss:$0 sm:$0xff] }
 0x3cb   : > { %1801 = vmatprep.subr.bf16.mxu0 %v1991_v40  ;;  %v1511_v23 = vld [vmem:[%s2414_s8] ss:$0 sm:$0xff] }
 0x3cc   : > { %1824 = vmatpush3.bf16.msra.mxu1 %v1823_v3 }
 0x3cd   : > { %1825 = vmatprep.subr.bf16.mxu1 %v1991_v40 }
 0x3ce   : > { %1803 = vmatpush3.bf16.msra.mxu0 %v1802_v0 }
 0x3cf   : > { %1804 = vmatprep.subr.bf16.mxu0 %v1991_v40 }
 0x3d0   : > { %1827 = vmatpush3.bf16.msra.mxu1 %v1826_v42 }
 0x3d1   : > { %1828 = vmatprep.subr.bf16.mxu1 %v1991_v40 }
 0x3d2   : > { %1806 = vmatpush3.bf16.msra.mxu0 %v1805_v43 }
 0x3d3   : > { %1807 = vmatprep.subr.bf16.mxu0 %v1991_v40 }
 0x3d4   : > { %1830 = vmatpush3.bf16.msra.mxu1 %v1829_v13 }
 0x3d5   : > { %1831 = vmatprep.subr.bf16.mxu1 %v1991_v40 }
 0x3d6   : > { %1809 = vmatpush3.bf16.msra.mxu0 %v1808_v10 }
 0x3d7   : > { %1810 = vmatprep.subr.bf16.mxu0 %v1991_v40 }
 0x3d8   : > { %1833 = vmatpush3.bf16.msra.mxu1 %v1832_v17 }
 0x3d9   : > { %1834 = vmatprep.subr.bf16.mxu1 %v1991_v40 }
 0x3da   : > { %1812 = vmatpush3.bf16.msra.mxu0 %v1811_v48 }
 0x3db   : > { %1813 = vmatprep.subr.bf16.mxu0 %v1991_v40 }
 0x3dc   : > { %1836 = vmatpush3.bf16.msra.mxu1 %v1835_v53 }
 0x3dd   : > { %1837 = vmatprep.subr.bf16.mxu1 %v1991_v40 }
 0x3de   : > { %1815 = vmatpush3.bf16.msra.mxu0 %v1814_v52 }
 0x3e0   : > { %1839 = vmatpush3.bf16.msra.mxu1 %v1838_v57 }
 0x3e1   : > { %1731 = vmatmul.mubr.f32.vlgmr.msra.gmra.mrb[0].mxu0 %v1185_v25 }
 0x4b4   : > { %v1275_v61 = vpop.f32.mrb[0].mxu0 }
 0x4b5   : > { %v1276_v29 = vadd.f32 %v1510_v60, %v1275_v61  ;;  %v1732_v31 = vpop.f32.mrb[1].mxu0 }
 0x4b7   : > { %v1279_v34 = vmax.f32 %v1276_v29, 0.0 }
 0x4b9   : > { %1766 = vmatmul.mubr.f32.vlgmr.msra.gmra.mrb[0].mxu1 %v1279_v34 }
 0x58c   : > { %v1369_v30 = vpop.f32.mrb[0].mxu1 }
 0x58d   : > { %v1370_v35 = vadd.f32 %v1511_v23, %v1369_v30  ;;  %v1767_v21 = vpop.f32.mrb[1].mxu1 }
 0x58f   : > { %v1374_v20 = vsel %vm1373_vm2, %v1370_v35, -inf }
 0x590   : > { %1375 = vmax.xlane.f32.xlu0 %v1374_v20 }
 0x61d   : > { %v1376_v36 = vpop.xlane.xlu0 %1375 }
 0x61e   : > { %v1377_v37 = vsub.f32 %v1370_v35, %v1376_v36 }
 0x620   : > { %v1378_v22 = vmul.f32 1.442695, %v1377_v37 }
 0x622   : > { %1959 = vpow2.f32 %v1378_v22 }
 0x62c   : > { %v1960_v24 = vpop.eup %1959 }
 0x62d   : > { %v1380_v38 = vsel %vm1373_vm2, %v1960_v24, 0.0 }
 0x62e   : > { %1381 = vadd.xlane.f32.xlu0 %v1380_v38 }
 0x6bb   : > { %v1382_v39 = vpop.xlane.xlu0 %1381 }
 0x6bc   : > { %1961 = vlog2.f32 %v1382_v39 }
 0x6c6   : > { %v1962_v40 = vpop.eup %1961 }
 0x6c7   : > { %v1384_v41 = vmul.f32 0.6931472, %v1962_v40 }
 0x6c9   : > { %v1385_v44 = vsub.f32 %v1377_v37, %v1384_v41 }
 0x6cb   : > { %1386 = vst.msk [vmem:[%s2415_s9] sm:$0xff] %vm1373_vm2, %v1385_v44 }
 0x6cc PF: > { %s19_s11 = sadd.s32 1, %s1985_s11   ;;  %s2416_s30 = smov %s1981_s10 }
 0x6cd   : > { %p16_p9 = scmp.ge.s32.totalorder %s19_s11, 5   ;;  %s2417_s10 = smov %s2419_s12 }
 0x6cf   :  { %18 = sbr.rel (!%p16_p9) target bundleno = 2 (0x2), region = 121 }

</bundles_post_ra>
